<compile_context>
chip_gen: v7x
topology: tpu7x:2x2x1
jax: 0.10.0
libtpu: 0.0.40
codegen_flags: <defaults>
</compile_context>

<pallas_src>
import functools
import math

import jax
import jax.numpy as jnp
from jax.experimental import pallas as pl
from jax.experimental.pallas import tpu as pltpu


_VMEM_LIMIT_BYTES = 48 * 1024 * 1024      # <= 48 MiB: safe on v7x (64 MiB/TC), roomy on v5e/v6e
_PIPE_BUDGET_BYTES = 32 * 1024 * 1024     # total budget for double-buffered tile copies
_MAX_BLOCK_ROWS = 4096                    # raised from 1024 per perf review


def _choose_block_rows(rows, features, dtype, n_streams):
    """Largest sublane-aligned row tile s.t. 2 * n_streams tile copies fit the pipeline budget."""
    itemsize = jnp.dtype(dtype).itemsize
    sublane = 32 // itemsize if itemsize in (1, 2, 4) else 8   # native sublane packing
    per_tile_bytes = _PIPE_BUDGET_BYTES // (2 * n_streams)
    br = per_tile_bytes // (features * itemsize)
    br = max(sublane, (br // sublane) * sublane)
    br = min(br, _MAX_BLOCK_ROWS)
    rows_up = ((rows + sublane - 1) // sublane) * sublane
    br = min(br, rows_up)
    return int(br)


# ----------------------------------------------------------------------------
# LayerNorm kernel
# ----------------------------------------------------------------------------
def _layernorm_kernel(x_ref, g_ref, b_ref, o_ref, *, eps: float):
    # x_ref: (block_rows, F); g_ref/b_ref: (1, F), already f32.
    # NOTE: the feature axis is never blocked (block last dim == full array dim), so
    # per-row statistics are exact and partial edge row-blocks are just masked writes.
    x = x_ref[...].astype(jnp.float32)
    f = x.shape[-1]
    ones_col = jnp.ones((f, 1), dtype=jnp.float32)
    # Lane reductions on the MXU (idle in this kernel) instead of the XLU:
    # per-row sum == (rows, F) @ (F, 1).  Two-pass (centered) variance avoids the
    # cancellation of the one-pass E[x^2] - mean^2 form.  torch.std is unbiased (N-1).
    mean = jnp.dot(x, ones_col, preferred_element_type=jnp.float32) * jnp.float32(1.0 / f)
    xc = x - mean
    var = jnp.dot(xc * xc, ones_col,
                  preferred_element_type=jnp.float32) * jnp.float32(1.0 / (f - 1))
    std = jnp.sqrt(var)
    # Per-row reciprocal (EUP slot) instead of a full-tile divide (VALU).
    inv = pl.reciprocal(std + jnp.float32(eps), approx=False)
    o_ref[...] = (xc * inv * g_ref[...] + b_ref[...]).astype(o_ref.dtype)


def layer_norm(x, a_2, b_2, eps: float = 1e-6, block_rows: int | None = None):
    """LayerNorm over the last axis of x (any leading shape); torch semantics."""
    orig_shape = x.shape
    features = orig_shape[-1]
    assert features >= 2, "unbiased std (ddof=1) requires features >= 2"
    rows = math.prod(orig_shape[:-1]) if len(orig_shape) > 1 else 1
    x2 = x.reshape(rows, features)
    g2 = a_2.astype(jnp.float32).reshape(1, features)
    b2 = b_2.astype(jnp.float32).reshape(1, features)

    if block_rows is None:
        block_rows = _choose_block_rows(rows, features, x.dtype, n_streams=2)

    grid = (pl.cdiv(rows, block_rows),)                 # no padding; edge block is masked
    spec = pl.BlockSpec((block_rows, features), lambda i: (i, 0))

    out = pl.pallas_call(
        functools.partial(_layernorm_kernel, eps=eps),
        out_shape=jax.ShapeDtypeStruct((rows, features), x.dtype),
        grid_spec=pltpu.PrefetchScalarGridSpec(
            num_scalar_prefetch=0,
            grid=grid,
            in_specs=[
                spec,
                pl.BlockSpec((1, features), lambda i: (0, 0)),   # gamma: resident
                pl.BlockSpec((1, features), lambda i: (0, 0)),   # beta:  resident
            ],
            out_specs=spec,
        ),
        compiler_params=pltpu.CompilerParams(
            dimension_semantics=("parallel",),
            vmem_limit_bytes=_VMEM_LIMIT_BYTES,
        ),
    )(x2, g2, b2)

    return out.reshape(orig_shape)


# ----------------------------------------------------------------------------
# Fused residual add (+ pre-generated inverted-dropout mask) kernels
# ----------------------------------------------------------------------------
def _residual_add_kernel(x_ref, y_ref, o_ref):
    # Deterministic path: add in the native dtype (no f32 round-trip, fewer casts).
    o_ref[...] = x_ref[...] + y_ref[...]


def _residual_add_mask_kernel(x_ref, y_ref, m_ref, o_ref):
    # m_ref holds the pre-scaled inverted-dropout mask: 0 or 1/(1-rate).
    o_ref[...] = x_ref[...] + y_ref[...] * m_ref[...]


def residual_add_dropout(x, y, *, rate: float = 0.0, deterministic: bool = True,
                         rng=None, block_rows: int | None = None):
    """out = x + dropout(y). Dropout is identity when deterministic or rate == 0."""
    orig_shape = x.shape
    features = orig_shape[-1]
    rows = math.prod(orig_shape[:-1]) if len(orig_shape) > 1 else 1
    x2 = x.reshape(rows, features)
    y2 = y.reshape(rows, features)

    apply_dropout = (not deterministic) and rate > 0.0
    n_streams = 4 if apply_dropout else 3
    if block_rows is None:
        block_rows = _choose_block_rows(rows, features, x.dtype, n_streams=n_streams)

    grid = (pl.cdiv(rows, block_rows),)
    spec = pl.BlockSpec((block_rows, features), lambda i: (i, 0))

    if apply_dropout:
        if rng is None:
            rng = jax.random.PRNGKey(0)
        # TODO(synk): the dropout mask comes from jax.random (cannot reproduce torch's RNG
        # stream); it is generated outside the kernel so the kernel uses only portable ops.
        keep = jax.random.bernoulli(rng, 1.0 - rate, (rows, features))
        mask = keep.astype(x.dtype) * jnp.asarray(1.0 / (1.0 - rate), dtype=x.dtype)
        kernel = _residual_add_mask_kernel
        operands = (x2, y2, mask)
        in_specs = [spec, spec, spec]
    else:
        kernel = _residual_add_kernel
        operands = (x2, y2)
        in_specs = [spec, spec]

    out = pl.pallas_call(
        kernel,
        out_shape=jax.ShapeDtypeStruct((rows, features), x.dtype),
        grid_spec=pltpu.PrefetchScalarGridSpec(
            num_scalar_prefetch=0,
            grid=grid,
            in_specs=in_specs,
            out_specs=spec,
        ),
        compiler_params=pltpu.CompilerParams(
            # Always "parallel": every grid step is order-independent (mask is data),
            # so v7x's second TensorCore is usable in training mode too.
            dimension_semantics=("parallel",),
            vmem_limit_bytes=_VMEM_LIMIT_BYTES,
        ),
    )(*operands)

    return out.reshape(orig_shape)


# ----------------------------------------------------------------------------
# SublayerConnection
# ----------------------------------------------------------------------------
class SublayerConnection:
    """x + dropout(sublayer(norm(x))); norm and residual(+dropout) run as Pallas kernels.

    `sublayer` is an arbitrary user-supplied JAX callable executed between the two
    kernels (it has no generic Pallas translation).
    """

    def __init__(self, size, dropout, eps: float = 1e-6):
        self.a_2 = jnp.ones((size,), dtype=jnp.float32)   # nn.Parameter(torch.ones)
        self.b_2 = jnp.zeros((size,), dtype=jnp.float32)  # nn.Parameter(torch.zeros)
        self.eps = eps
        self.dropout_rate = float(dropout)

    def __call__(self, x, sublayer, sublayer_type, *, deterministic=True, rng=None):
        assert sublayer_type in ("attn", "ff")
        h = layer_norm(x, self.a_2, self.b_2, eps=self.eps)
        if sublayer_type == "ff":
            y = sublayer(h)
            return residual_add_dropout(x, y, rate=self.dropout_rate,
                                        deterministic=deterministic, rng=rng)
        res, attn = sublayer(h)
        out = residual_add_dropout(x, res, rate=self.dropout_rate,
                                   deterministic=deterministic, rng=rng)
        return out, attn


if __name__ == "__main__":
    key = jax.random.PRNGKey(0)
    kx, kw, kd = jax.random.split(key, 3)

    batch, seq, hidden = 2, 8, 128          # 128 features -> lane-dense stores
    x = jax.random.normal(kx, (batch, seq, hidden), dtype=jnp.float32)
    w = jax.random.normal(kw, (hidden, hidden), dtype=jnp.float32) * 0.02

    slc = SublayerConnection(hidden, dropout=0.1)

    # Pure-JAX reference for the norm (unbiased std, eps added to std).
    def ref_norm(v):
        mean = jnp.mean(v, axis=-1, keepdims=True)
        std = jnp.std(v, axis=-1, keepdims=True, ddof=1)
        return slc.a_2 * (v - mean) / (std + slc.eps) + slc.b_2

    # --- 'ff' branch (eval mode: dropout is identity) ---
    ff = lambda h: jnp.dot(h, w)
    out_ff = jax.block_until_ready(slc(x, ff, "ff", deterministic=True))
    ref_ff = x + jnp.dot(ref_norm(x), w)
    assert out_ff.shape == x.shape and out_ff.dtype == x.dtype
    assert float(jnp.max(jnp.abs(out_ff - ref_ff))) < 1e-4

    # --- 'attn' branch (sublayer returns (res, attn)) ---
    def attn_sublayer(h):
        logits = jnp.einsum("bqd,bkd->bqk", h, h) / jnp.sqrt(jnp.float32(hidden))
        attn_w = jax.nn.softmax(logits, axis=-1)
        return jnp.einsum("bqk,bkd->bqd", attn_w, h), attn_w

    out_attn, attn_w = slc(x, attn_sublayer, "attn", deterministic=True)
    out_attn = jax.block_until_ready(out_attn)
    res_ref, attn_ref = attn_sublayer(ref_norm(x))
    ref_attn_out = x + res_ref
    assert float(jnp.max(jnp.abs(out_attn - ref_attn_out))) < 1e-4
    assert float(jnp.max(jnp.abs(attn_w - attn_ref))) < 1e-4

    # --- training-mode dropout path (jax.random mask): exactness vs. its own reference ---
    out_train = jax.block_until_ready(
        slc(x, ff, "ff", deterministic=False, rng=kd))
    assert out_train.shape == x.shape
    assert bool(jnp.all(jnp.isfinite(out_train)))
    # Same mask construction as the wrapper -> must match exactly (up to fp assoc).
    rows = batch * seq
    keep_ref = jax.random.bernoulli(kd, 1.0 - slc.dropout_rate, (rows, hidden))
    mask_ref = keep_ref.astype(x.dtype) * jnp.asarray(1.0 / (1.0 - slc.dropout_rate), x.dtype)
    y_ref = jnp.dot(ref_norm(x), w).reshape(rows, hidden)
    train_ref = (x.reshape(rows, hidden) + y_ref * mask_ref).reshape(x.shape)
    assert float(jnp.max(jnp.abs(out_train - train_ref))) < 1e-4

    print("KERNEL_OK")
</pallas_src>

<mosaic_0001>
module attributes {stable_mosaic.version = 11 : i64} {
  func.func @_layernorm_kernel(%arg0: i32, %arg1: memref<16x128xf32, #tpu.memory_space<vmem>>, %arg2: memref<1x128xf32, #tpu.memory_space<vmem>>, %arg3: memref<1x128xf32, #tpu.memory_space<vmem>>, %arg4: memref<16x128xf32, #tpu.memory_space<vmem>>) attributes {dimension_semantics = [#tpu.dimension_semantics<parallel>], iteration_bounds = array<i64: 1>, scalar_prefetch = 0 : i64, scratch_operands = 0 : i64, tpu.core_type = #tpu.core_type<tc>, window_params = [{transform_indices = @transform_0, window_bounds = array<i64: 16, 128>}, {pipeline_mode = #tpu.pipeline_mode<synchronous>, transform_indices = @transform_1, window_bounds = array<i64: 1, 128>}, {pipeline_mode = #tpu.pipeline_mode<synchronous>, transform_indices = @transform_2, window_bounds = array<i64: 1, 128>}, {transform_indices = @transform_3, window_bounds = array<i64: 16, 128>}]} {
    %c0 = arith.constant 0 : index
    %c0_0 = arith.constant 0 : index
    %0 = vector.load %arg1[%c0, %c0_0] : memref<16x128xf32, #tpu.memory_space<vmem>>, vector<16x128xf32>
    %cst = arith.constant 1.000000e+00 : f32
    %1 = vector.broadcast %cst : f32 to vector<128x1xf32>
    %cst_1 = arith.constant dense<0.000000e+00> : vector<16x1xf32>
    %2 = tpu.matmul %0, %1, %cst_1 {dimension_numbers = #tpu.dot_dimension_numbers<[1], [0], [0], [1], [0, 0, 1, 1], [], []>} : vector<16x128xf32>, vector<128x1xf32>, vector<16x1xf32> -> vector<16x1xf32>
    %cst_2 = arith.constant 7.812500e-03 : f32
    %3 = vector.broadcast %cst_2 : f32 to vector<16x1xf32>
    %4 = arith.mulf %2, %3 : vector<16x1xf32>
    %5 = vector.broadcast %4 : vector<16x1xf32> to vector<16x128xf32>
    %6 = arith.subf %0, %5 : vector<16x128xf32>
    %7 = arith.mulf %6, %6 : vector<16x128xf32>
    %cst_3 = arith.constant dense<0.000000e+00> : vector<16x1xf32>
    %8 = tpu.matmul %7, %1, %cst_3 {dimension_numbers = #tpu.dot_dimension_numbers<[1], [0], [0], [1], [0, 0, 1, 1], [], []>} : vector<16x128xf32>, vector<128x1xf32>, vector<16x1xf32> -> vector<16x1xf32>
    %cst_4 = arith.constant 0.00787401571 : f32
    %9 = vector.broadcast %cst_4 : f32 to vector<16x1xf32>
    %10 = arith.mulf %8, %9 : vector<16x1xf32>
    %11 = math.sqrt %10 : vector<16x1xf32>
    %cst_5 = arith.constant 9.99999997E-7 : f32
    %12 = vector.broadcast %cst_5 : f32 to vector<16x1xf32>
    %13 = arith.addf %11, %12 : vector<16x1xf32>
    %14 = tpu.reciprocal %13 : vector<16x1xf32> -> vector<16x1xf32>
    %15 = vector.broadcast %14 : vector<16x1xf32> to vector<16x128xf32>
    %16 = arith.mulf %6, %15 : vector<16x128xf32>
    %c0_6 = arith.constant 0 : index
    %c0_7 = arith.constant 0 : index
    %17 = vector.load %arg2[%c0_6, %c0_7] : memref<1x128xf32, #tpu.memory_space<vmem>>, vector<1x128xf32>
    %18 = vector.broadcast %17 : vector<1x128xf32> to vector<16x128xf32>
    %19 = arith.mulf %16, %18 : vector<16x128xf32>
    %c0_8 = arith.constant 0 : index
    %c0_9 = arith.constant 0 : index
    %20 = vector.load %arg3[%c0_8, %c0_9] : memref<1x128xf32, #tpu.memory_space<vmem>>, vector<1x128xf32>
    %21 = vector.broadcast %20 : vector<1x128xf32> to vector<16x128xf32>
    %22 = arith.addf %19, %21 : vector<16x128xf32>
    %c0_10 = arith.constant 0 : index
    %c0_11 = arith.constant 0 : index
    %23 = vector.load %arg4[%c0_10, %c0_11] : memref<16x128xf32, #tpu.memory_space<vmem>>, vector<16x128xf32>
    tpu.vector_store %arg4[%c0_10, %c0_11], %22 {strides = array<i32>} : memref<16x128xf32, #tpu.memory_space<vmem>>, vector<16x128xf32>,
    return
  }
  func.func @transform_0(%arg0: i32) -> (i32, i32) {
    %c0_i32 = arith.constant 0 : i32
    %c0_i32_0 = arith.constant 0 : i32
    return %arg0, %c0_i32 : i32, i32
  }
  func.func @transform_1(%arg0: i32) -> (i32, i32) {
    %c0_i32 = arith.constant 0 : i32
    %c0_i32_0 = arith.constant 0 : i32
    %c0_i32_1 = arith.constant 0 : i32
    return %c0_i32, %c0_i32_0 : i32, i32
  }
  func.func @transform_2(%arg0: i32) -> (i32, i32) {
    %c0_i32 = arith.constant 0 : i32
    %c0_i32_0 = arith.constant 0 : i32
    %c0_i32_1 = arith.constant 0 : i32
    return %c0_i32, %c0_i32_0 : i32, i32
  }
  func.func @transform_3(%arg0: i32) -> (i32, i32) {
    %c0_i32 = arith.constant 0 : i32
    %c0_i32_0 = arith.constant 0 : i32
    return %arg0, %c0_i32 : i32, i32
  }
}

</mosaic_0001>

<bundles_post_ra>
// kernel: tpu_custom_call.1
= control target key start
LH: loop header
LB: loop body
LE: loop exit
PB: predicated region body
PF: predicated region fallthrough
CT: control target
= control target key end

     0   :  { %8 = vsyncpa [#allocation3], 0  ;;  %s532_s0 = inlined_call_operand.hbm [shape: f32[16,128], index: 0, kind: input, shape index: {}]   ;;  %s533_s1 = inlined_call_operand.vmem [shape: f32[1,128], index: 1, kind: input, shape index: {}]   ;;  %s534_s2 = inlined_call_operand.vmem [shape: f32[1,128], index: 2, kind: input, shape index: {}]   ;;  %s535_s3 = inlined_call_operand.hbm [shape: f32[16,128], index: 3, kind: output, shape index: {}]  }
   0x1   :  { %9 = vsyncpa [#allocation4], 0  ;;  %s470_s12 = smov [#allocation2]   ;;  %s422_s16 = scalar_lea.hbm %s532_s0, 256 }
   0x2   :  { %s15_s13 = sshll.u32 %s470_s12, 4  ;;  %p423_p0 = scmp.ne.s32.totalorder %s532_s0, %s422_s16  ;;  %s16_s13 = int_to_ptr.vmem [resolvable:$true] %s15_s13 }
   0x3   :  { %p426_p1 = scmp.lt.u32.totalorder %s422_s16, %s532_s0 }
   0x5   :  { %p428_p2 = pnand %p426_p1, %p423_p0 }
   0x7   :  { %431 = shalt.err (!%p428_p2)
}
   0x8   :  { %s432_s21 = scalar_lea.vmem %s16_s13, 256  ;;  %p437_p4 = scmp.lt.s32.totalorder %s16_s13, %s16_s13 }
   0x9   :  { %p433_p3 = scmp.ne.s32.totalorder %s16_s13, %s432_s21  ;;  %p438_p5 = scmp.lt.s32.totalorder %s432_s21, %s432_s21 }
   0xb   :  { %p439_p6 = por %p438_p5, %p437_p4 }
   0xd   :  { %p440_p7 = pnand %p439_p6, %p433_p3 }
   0xf   :  { %443 = shalt.err (!%p440_p7)
}
  0x10   :  { %s471_s22 = smov 128   ;;  %s472_s23 = smov 8  }
  0x11   :  { %21 = dma.hbm_to_vmem [thread:$0]  %s532_s0, 256, %s16_s13, [#allocation3], %s471_s22, %s471_s22, %s472_s23  }
  0x12   :  { %466 = dma.done.wait [#allocation3], 256  }
  0x13   :  { %467 = vsyncadd [#allocation3], 4294967040  ;;  %v473_v0 = vmov 1.0|1.0   ;;  %v29_v1 = vld [vmem:[#allocation2] sm:$0xff]  ;;  %v30_v2 = vld [vmem:[#allocation2 + $0x8] sm:$0xff] }
  0x14   :  { %374 = vmatprep.subr.bf16.mxu0 %v473_v0  ;;  %390 = vmatprep.subr.bf16.mxu1 %v473_v0  ;;  %v474_v3 = vmov 0   ;;  %v266_v32 = vld [vmem:[%s533_s1] ss:$0 sm:$0xff]  ;;  %s475_s29 = smov [#allocation5]  }
  0x15   :  { %375 = vmatpush3.bf16.msra.mxu0 %v473_v0  ;;  %391 = vmatpush3.bf16.msra.mxu1 %v473_v0  ;;  %v267_v35 = vld [vmem:[%s534_s2] ss:$0 sm:$0xff]  ;;  %s254_s30 = sshll.u32 %s475_s29, 4  ;;  %s255_s30 = int_to_ptr.vmem [resolvable:$true] %s254_s30 }
  0x16   :  { %376 = vmatprep.subr.bf16.mxu0 %v473_v0  ;;  %392 = vmatprep.subr.bf16.mxu1 %v473_v0  ;;  %s444_s4 = scalar_lea.vmem %s255_s30, 256  ;;  %p449_p9 = scmp.lt.s32.totalorder %s255_s30, %s255_s30 }
  0x17   :  { %336 = vmatprep.mubr.f32.mxu0 %v29_v1  ;;  %412 = vset.pattern.permute.xlu0 %v474_v3  ;;  %p445_p8 = scmp.ne.s32.totalorder %s255_s30, %s444_s4  ;;  %p450_p10 = scmp.lt.s32.totalorder %s444_s4, %s444_s4 }
  0x18   :  { %413 = vset.pattern.permute.xlu1 %v474_v3 }
  0x19   :  { %377 = vmatpush3.bf16.msra.mxu0 %v473_v0  ;;  %393 = vmatpush3.bf16.msra.mxu1 %v473_v0  ;;  %p451_p11 = por %p450_p10, %p449_p9 }
  0x1a   :  { %378 = vmatprep.subr.bf16.mxu0 %v473_v0  ;;  %394 = vmatprep.subr.bf16.mxu1 %v473_v0 }
  0x1b   :  { %p452_p12 = pnand %p451_p11, %p445_p8 }
  0x1d   :  { %379 = vmatpush3.bf16.msra.mxu0 %v473_v0  ;;  %395 = vmatpush3.bf16.msra.mxu1 %v473_v0 }
  0x1e   :  { %380 = vmatprep.subr.bf16.mxu0 %v473_v0  ;;  %396 = vmatprep.subr.bf16.mxu1 %v473_v0 }
  0x21   :  { %381 = vmatpush3.bf16.msra.mxu0 %v473_v0  ;;  %397 = vmatpush3.bf16.msra.mxu1 %v473_v0 }
  0x22   :  { %382 = vmatprep.subr.bf16.mxu0 %v473_v0  ;;  %398 = vmatprep.subr.bf16.mxu1 %v473_v0 }
  0x25   :  { %383 = vmatpush3.bf16.msra.mxu0 %v473_v0  ;;  %399 = vmatpush3.bf16.msra.mxu1 %v473_v0 }
  0x26   :  { %384 = vmatprep.subr.bf16.mxu0 %v473_v0  ;;  %400 = vmatprep.subr.bf16.mxu1 %v473_v0 }
  0x29   :  { %385 = vmatpush3.bf16.msra.mxu0 %v473_v0  ;;  %401 = vmatpush3.bf16.msra.mxu1 %v473_v0 }
  0x2a   :  { %386 = vmatprep.subr.bf16.mxu0 %v473_v0  ;;  %402 = vmatprep.subr.bf16.mxu1 %v473_v0 }
  0x2d   :  { %387 = vmatpush3.bf16.msra.mxu0 %v473_v0  ;;  %403 = vmatpush3.bf16.msra.mxu1 %v473_v0 }
  0x2e   :  { %388 = vmatprep.subr.bf16.mxu0 %v473_v0  ;;  %404 = vmatprep.subr.bf16.mxu1 %v473_v0 }
  0x31   :  { %389 = vmatpush3.bf16.msra.mxu0 %v473_v0  ;;  %405 = vmatpush3.bf16.msra.mxu1 %v473_v0 }
  0x34   :  { %337 = vmatmul.mubr.f32.vlgmr.msra.gmra.mrb[0].mxu0 %v30_v2 }
 0x107   :  { %v338_v4 = vpop.f32.mrb[0].mxu0 }
 0x108   :  { %v97_v5 = vpop.f32.mrb[1].mxu0  ;;  %v107_v7 = vmul.f32 0.0078125, %v338_v4 }
 0x109   :  { %v106_v6 = vmul.f32 0.0078125, %v97_v5 }
 0x10b   :  { %110 = vperm.xlu0 %412, %v106_v6  }
 0x10f   :  { %115 = vperm.xlu0 %412, %v107_v7  }
 0x18a   :  { %v111_v8 = vpop.permute.xlu0 %110 }
 0x18b   :  { %v118_v9 = vsub.f32 %v29_v1, %v111_v8 }
 0x18d   :  { %v120_v10 = vmul.f32 %v118_v9, %v118_v9 }
 0x18e   :  { %v116_v11 = vpop.permute.xlu0 %115 }
 0x18f   :  { %v119_v12 = vsub.f32 %v30_v2, %v116_v11  ;;  %371 = vmatprep.mubr.f32.mxu1 %v120_v10 }
 0x191   :  { %v121_v13 = vmul.f32 %v119_v12, %v119_v12 }
 0x193   :  { %372 = vmatmul.mubr.f32.vlgmr.msra.gmra.mrb[0].mxu1 %v121_v13 }
 0x266   :  { %v373_v14 = vpop.f32.mrb[0].mxu1 }
 0x267   :  { %v198_v15 = vmul.f32 0.007874016, %v373_v14  ;;  %v188_v16 = vpop.f32.mrb[1].mxu1 }
 0x268   :  { %v197_v17 = vmul.f32 0.007874016, %v188_v16 }
 0x269   :  { %414 = vrsqrt.f32 %v198_v15  ;;  %vm208_vm0 = vcmp.eq.f32.partialorder %v198_v15, inf  ;;  %v211_v23 = vand.u32 2147483648, %v198_v15  ;;  %vm210_vm2 = vcmp.eq.f32.partialorder %v198_v15, 0.0 }
 0x26a   :  { %416 = vrsqrt.f32 %v197_v17  ;;  %vm201_vm1 = vcmp.eq.f32.partialorder %v197_v17, inf  ;;  %v204_v24 = vand.u32 2147483648, %v197_v17  ;;  %vm203_vm3 = vcmp.eq.f32.partialorder %v197_v17, 0.0 }
 0x273   :  { %v415_v18 = vpop.eup %414 }
 0x274   :  { %v417_v19 = vpop.eup %416  ;;  %v207_v20 = vmul.f32 %v415_v18, %v198_v15 }
 0x275   :  { %v200_v21 = vmul.f32 %v417_v19, %v197_v17 }
 0x276   :  { %v209_v22 = vsel %vm208_vm0, %v198_v15, %v207_v20 }
 0x277   :  { %v202_v25 = vsel %vm201_vm1, %v197_v17, %v200_v21  ;;  %v212_v26 = vsel %vm210_vm2, %v211_v23, %v209_v22 }
 0x278   :  { %v205_v27 = vsel %vm203_vm3, %v204_v24, %v202_v25  ;;  %v214_v29 = vadd.f32 1e-06, %v212_v26 }
 0x279   :  { %v213_v28 = vadd.f32 1e-06, %v205_v27 }
 0x27b   :  { %418 = vrcp.f32 %v213_v28 }
 0x27c   :  { %420 = vrcp.f32 %v214_v29 }
 0x285   :  { %v419_v30 = vpop.eup %418 }
 0x286   :  { %219 = vperm.xlu1 %413, %v419_v30   ;;  %v421_v31 = vpop.eup %420 }
 0x28a   :  { %224 = vperm.xlu1 %413, %v421_v31  }
 0x305   :  { %v220_v33 = vpop.permute.xlu1 %219 }
 0x306   :  { %v227_v34 = vmul.f32 %v220_v33, %v118_v9 }
 0x308   :  { %v236_v36 = vmul.f32 %v266_v32, %v227_v34 }
 0x309   :  { %v225_v37 = vpop.permute.xlu1 %224 }
 0x30a   :  { %v245_v38 = vadd.f32 %v267_v35, %v236_v36  ;;  %v228_v39 = vmul.f32 %v225_v37, %v119_v12 }
 0x30c   :  { %247 = vst [vmem:[#allocation5] sm:$0xff] %v245_v38  ;;  %v237_v40 = vmul.f32 %v266_v32, %v228_v39 }
 0x30e   :  { %v246_v41 = vadd.f32 %v267_v35, %v237_v40 }
 0x310   :  { %248 = vst [vmem:[#allocation5 + $0x8] sm:$0xff] %v246_v41 }
 0x311   :  { %455 = shalt.err (!%p452_p12)
}
 0x312   :  { %s456_s5 = scalar_lea.hbm %s535_s3, 256 }
 0x313   :  { %p457_p13 = scmp.ne.s32.totalorder %s535_s3, %s456_s5  ;;  %p460_p0 = scmp.lt.u32.totalorder %s456_s5, %s535_s3 }
 0x315   :  { %p462_p1 = pnand %p460_p0, %p457_p13 }
 0x317   :  { %465 = shalt.err (!%p462_p1)
}
 0x318   :  { %260 = dma.vmem_to_hbm [thread:$0]  %s255_s30, 256, %s535_s3, [#allocation4], %s471_s22, %s471_s22, %s472_s23  }
 0x319   :  { %468 = dma.done.wait [#allocation4], 256  }
 0x31a   :  { %469 = vsyncadd [#allocation4], 4294967040 }
 0x31b   :  { %264 = vsyncpa [#allocation3], 1 }
 0x31c   :  { %265 = vsyncpa [#allocation4], 1 }

</bundles_post_ra>
